<compile_context>
chip_gen: v6e
topology: v6e:2x2x1
jax: 0.10.0
libtpu: 0.0.40
codegen_flags: <defaults>
</compile_context>

<pallas_src>
import functools

import jax
import jax.numpy as jnp
from jax.experimental import pallas as pl
from jax.experimental.pallas import tpu as pltpu


# --------------------------------------------------------------------------
# Kernels (one grid step = one tile of rows; output = per-row loss column)
# --------------------------------------------------------------------------
def _soft_target_kernel(logits_ref, tgt_ref, out_ref):
    x = logits_ref[...].astype(jnp.float32)
    t = tgt_ref[...].astype(jnp.float32)

    m = jnp.max(x, axis=1, keepdims=True)
    e = jnp.exp(x - m)
    inv = pl.reciprocal(jnp.sum(e, axis=1, keepdims=True))   # exact on purpose
    log_prob = jnp.log(1.0 - e * inv + 1e-12)

    out_ref[...] = jnp.sum(t * log_prob, axis=1, keepdims=True)   # (tile_n, 1)


def _hard_target_kernel(logits_ref, tgt_ref, out_ref, *, n_classes, epsilon):
    tile_n, c = logits_ref.shape

    x = logits_ref[...].astype(jnp.float32)
    m = jnp.max(x, axis=1, keepdims=True)
    e = jnp.exp(x - m)
    inv = pl.reciprocal(jnp.sum(e, axis=1, keepdims=True))   # exact on purpose

    tgt = tgt_ref[...].astype(jnp.int32)                              # (tile_n, 1)
    col = jax.lax.broadcasted_iota(jnp.int32, (tile_n, c), 1)
    onehot = col == tgt                                               # (tile_n, c)

    if epsilon > 0.0:
        # Fused weight: (1-eps)*onehot + eps/C, single cross-lane reduction.
        log_prob = jnp.log(1.0 - e * inv + 1e-12)
        w = jnp.where(onehot,
                      jnp.float32(1.0 - epsilon + epsilon / n_classes),
                      jnp.float32(epsilon / n_classes))
        out_ref[...] = jnp.sum(w * log_prob, axis=1, keepdims=True)
    else:
        # nll_loss branch: select the target's exp first, then do the
        # 1-x / log math only on the (tile_n, 1) selected value.
        e_sel = jnp.sum(jnp.where(onehot, e, 0.0), axis=1, keepdims=True)
        out_ref[...] = jnp.log(1.0 - e_sel * inv + 1e-12)


# --------------------------------------------------------------------------
# Wrappers
# --------------------------------------------------------------------------
_DB_FOOTPRINT_BUDGET = 16 * 1024 * 1024   # double-buffered large-input bytes
_VMEM_LIMIT_BYTES = 32 * 1024 * 1024      # <= scoped ceiling on v5e/v6e/v7x


def _choose_tile_n(n, bytes_per_row):
    """Largest multiple-of-8 row tile whose double-buffered footprint fits."""
    rows = _DB_FOOTPRINT_BUDGET // (2 * max(1, bytes_per_row))
    rows = max(8, (rows // 8) * 8)
    if rows >= n:
        return n                       # full-extent block is always legal
    return rows


def _call(kernel, logits, second_input, second_cols, tile_n):
    n, c = logits.shape
    grid = (pl.cdiv(n, tile_n),)
    per_row = pl.pallas_call(
        kernel,
        out_shape=jax.ShapeDtypeStruct((n, 1), jnp.float32),
        grid_spec=pltpu.PrefetchScalarGridSpec(
            num_scalar_prefetch=0,
            grid=grid,
            in_specs=[
                pl.BlockSpec((tile_n, c), lambda i: (i, 0)),
                pl.BlockSpec((tile_n, second_cols), lambda i: (i, 0)),
            ],
            out_specs=pl.BlockSpec((tile_n, 1), lambda i: (i, 0)),
        ),
        compiler_params=pltpu.CompilerParams(
            dimension_semantics=("parallel",),          # megacore-friendly
            vmem_limit_bytes=_VMEM_LIMIT_BYTES),
    )(logits, second_input)
    # Tiny final reduction (N floats) stays in XLA.
    return -jnp.sum(per_row) / jnp.float32(n)


def _non_saturating_loss_soft(logits, soft_targets, tile_n=None):
    """logits: (N, C); soft_targets: (N, C). Native dtypes; cast in-kernel."""
    n, c = logits.shape
    if tile_n is None:
        bytes_per_row = c * (jnp.dtype(logits.dtype).itemsize
                             + jnp.dtype(soft_targets.dtype).itemsize)
        tile_n = _choose_tile_n(n, bytes_per_row)
    return _call(_soft_target_kernel, logits, soft_targets, c, tile_n)


def _non_saturating_loss_hard(logits, targets, epsilon, tile_n=None):
    """logits: (N, C); targets: (N,) int class ids. No one-hot in HBM."""
    n, c = logits.shape
    tgt2d = targets.reshape(n, 1).astype(jnp.int32)
    if tile_n is None:
        bytes_per_row = c * jnp.dtype(logits.dtype).itemsize + 4
        tile_n = _choose_tile_n(n, bytes_per_row)
    kernel = functools.partial(_hard_target_kernel, n_classes=c,
                               epsilon=float(epsilon))
    return _call(kernel, logits, tgt2d, 1, tile_n)


class NonSaturatingLoss:
    """JAX/Pallas port of the PyTorch NonSaturatingLoss module."""

    def __init__(self, epsilon: float = 0.0):
        self.epsilon = float(epsilon)

    def __call__(self, logits, targets):
        if targets.ndim == 2:
            # Already soft targets.
            return _non_saturating_loss_soft(logits, targets)
        # Integer class ids; label smoothing folded into the kernel.
        return _non_saturating_loss_hard(logits, targets, self.epsilon)


# --------------------------------------------------------------------------
# Pure-JAX reference (for sanity checking)
# --------------------------------------------------------------------------
def _reference(logits, targets, epsilon):
    n_classes = logits.shape[1]
    if targets.ndim == 2:
        t = targets.astype(jnp.float32)
    else:
        t = jax.nn.one_hot(targets, n_classes, dtype=jnp.float32)
        if epsilon > 0:
            t = (1.0 - epsilon) * t + epsilon / n_classes
    probs = jax.nn.softmax(logits.astype(jnp.float32), axis=1)
    log_prob = jnp.log(1.0 - probs + 1e-12)
    return -jnp.mean(jnp.sum(t * log_prob, axis=1))


if __name__ == "__main__":
    key = jax.random.PRNGKey(0)
    k1, k2, k3, k4 = jax.random.split(key, 4)

    N, C = 8, 32
    logits = jax.random.normal(k1, (N, C), dtype=jnp.float32)
    targets = jax.random.randint(k2, (N,), 0, C, dtype=jnp.int32)

    # Path 1: label-smoothed hard targets (epsilon > 0).
    loss = jax.block_until_ready(NonSaturatingLoss(epsilon=0.1)(logits, targets))
    ref = _reference(logits, targets, 0.1)
    assert jnp.allclose(loss, ref, atol=1e-5, rtol=1e-5), (loss, ref)

    # Path 2: plain hard targets (epsilon = 0, nll_loss branch).
    loss0 = jax.block_until_ready(NonSaturatingLoss(epsilon=0.0)(logits, targets))
    ref0 = _reference(logits, targets, 0.0)
    assert jnp.allclose(loss0, ref0, atol=1e-5, rtol=1e-5), (loss0, ref0)

    # Path 3: soft (2-D) targets.
    soft = jax.nn.softmax(jax.random.normal(k3, (N, C), dtype=jnp.float32), axis=1)
    loss_s = jax.block_until_ready(NonSaturatingLoss(epsilon=0.0)(logits, soft))
    ref_s = _reference(logits, soft, 0.0)
    assert jnp.allclose(loss_s, ref_s, atol=1e-5, rtol=1e-5), (loss_s, ref_s)

    # Path 4: multi-tile grid + ragged last tile (N=20 with 8-row tiles),
    # hard-target path.
    N2 = 20
    logits2 = jax.random.normal(k4, (N2, C), dtype=jnp.float32)
    targets2 = jax.random.randint(k2, (N2,), 0, C, dtype=jnp.int32)
    loss2 = jax.block_until_ready(
        _non_saturating_loss_hard(logits2, targets2, 0.1, tile_n=8))
    ref2 = _reference(logits2, targets2, 0.1)
    assert jnp.allclose(loss2, ref2, atol=1e-5, rtol=1e-5), (loss2, ref2)

    # Path 5: multi-tile + ragged last tile, soft-target path.
    soft2 = jax.nn.softmax(jax.random.normal(k3, (N2, C), dtype=jnp.float32),
                           axis=1)
    loss2s = jax.block_until_ready(
        _non_saturating_loss_soft(logits2, soft2, tile_n=8))
    ref2s = _reference(logits2, soft2, 0.0)
    assert jnp.allclose(loss2s, ref2s, atol=1e-5, rtol=1e-5), (loss2s, ref2s)

    print("KERNEL_OK")
</pallas_src>

<mosaic_0001>
module attributes {stable_mosaic.version = 11 : i64} {
  func.func @_hard_target_kernel(%arg0: i32, %arg1: memref<8x32xf32, #tpu.memory_space<vmem>>, %arg2: memref<8x1xi32, #tpu.memory_space<vmem>>, %arg3: memref<8x1xf32, #tpu.memory_space<vmem>>) attributes {dimension_semantics = [#tpu.dimension_semantics<parallel>], iteration_bounds = array<i64: 1>, scalar_prefetch = 0 : i64, scratch_operands = 0 : i64, tpu.core_type = #tpu.core_type<tc>, window_params = [{transform_indices = @transform_0, window_bounds = array<i64: 8, 32>}, {transform_indices = @transform_1, window_bounds = array<i64: 8, 1>}, {transform_indices = @transform_2, window_bounds = array<i64: 8, 1>}]} {
    %c0 = arith.constant 0 : index
    %c0_0 = arith.constant 0 : index
    %0 = vector.load %arg1[%c0, %c0_0] : memref<8x32xf32, #tpu.memory_space<vmem>>, vector<8x32xf32>
    %cst = arith.constant dense<0xFF800000> : vector<8xf32>
    %1 = vector.multi_reduction <maximumf>, %0, %cst [1] : vector<8x32xf32> to vector<8xf32>
    %2 = vector.shape_cast %1 : vector<8xf32> to vector<8x1xf32>
    %3 = vector.broadcast %2 : vector<8x1xf32> to vector<8x32xf32>
    %4 = arith.subf %0, %3 : vector<8x32xf32>
    %5 = math.exp %4 : vector<8x32xf32>
    %cst_1 = arith.constant dense<0.000000e+00> : vector<8xf32>
    %6 = vector.multi_reduction <add>, %5, %cst_1 [1] : vector<8x32xf32> to vector<8xf32>
    %7 = vector.shape_cast %6 : vector<8xf32> to vector<8x1xf32>
    %8 = tpu.reciprocal %7 : vector<8x1xf32> -> vector<8x1xf32>
    %c0_2 = arith.constant 0 : index
    %c0_3 = arith.constant 0 : index
    %9 = vector.load %arg2[%c0_2, %c0_3] : memref<8x1xi32, #tpu.memory_space<vmem>>, vector<8x1xi32>
    %10 = tpu.iota {dimensions = array<i32: 1>} : vector<8x32xi32>
    %11 = vector.broadcast %9 : vector<8x1xi32> to vector<8x32xi32>
    %12 = arith.cmpi eq, %10, %11 : vector<8x32xi32>
    %13 = vector.broadcast %8 : vector<8x1xf32> to vector<8x32xf32>
    %14 = arith.mulf %5, %13 : vector<8x32xf32>
    %cst_4 = arith.constant 1.000000e+00 : f32
    %15 = vector.broadcast %cst_4 : f32 to vector<8x32xf32>
    %16 = arith.subf %15, %14 : vector<8x32xf32>
    %cst_5 = arith.constant 9.99999996E-13 : f32
    %17 = vector.broadcast %cst_5 : f32 to vector<8x32xf32>
    %18 = arith.addf %16, %17 : vector<8x32xf32>
    %19 = math.log %18 : vector<8x32xf32>
    %cst_6 = arith.constant 0.903124988 : f32
    %cst_7 = arith.constant 3.125000e-03 : f32
    %20 = vector.broadcast %cst_6 : f32 to vector<8x32xf32>
    %21 = vector.broadcast %cst_7 : f32 to vector<8x32xf32>
    %22 = arith.select %12, %20, %21 : vector<8x32xi1>, vector<8x32xf32>
    %23 = arith.mulf %22, %19 : vector<8x32xf32>
    %cst_8 = arith.constant dense<0.000000e+00> : vector<8xf32>
    %24 = vector.multi_reduction <add>, %23, %cst_8 [1] : vector<8x32xf32> to vector<8xf32>
    %25 = vector.shape_cast %24 : vector<8xf32> to vector<8x1xf32>
    %c0_9 = arith.constant 0 : index
    %c0_10 = arith.constant 0 : index
    %26 = vector.load %arg3[%c0_9, %c0_10] : memref<8x1xf32, #tpu.memory_space<vmem>>, vector<8x1xf32>
    tpu.vector_store %arg3[%c0_9, %c0_10], %25 {strides = array<i32>} : memref<8x1xf32, #tpu.memory_space<vmem>>, vector<8x1xf32>,
    return
  }
  func.func @transform_0(%arg0: i32) -> (i32, i32) {
    %c0_i32 = arith.constant 0 : i32
    %c0_i32_0 = arith.constant 0 : i32
    return %arg0, %c0_i32 : i32, i32
  }
  func.func @transform_1(%arg0: i32) -> (i32, i32) {
    %c0_i32 = arith.constant 0 : i32
    %c0_i32_0 = arith.constant 0 : i32
    return %arg0, %c0_i32 : i32, i32
  }
  func.func @transform_2(%arg0: i32) -> (i32, i32) {
    %c0_i32 = arith.constant 0 : i32
    %c0_i32_0 = arith.constant 0 : i32
    return %arg0, %c0_i32 : i32, i32
  }
}

</mosaic_0001>

<bundles_post_ra>
// kernel: tpu_custom_call.1
= control target key start
LH: loop header
LB: loop body
LE: loop exit
PB: predicated region body
PF: predicated region fallthrough
CT: control target
= control target key end

     0   :  { %vm12_vm0 = vcmask 261120   ;;  %v56_v2 = vmov 0   ;;  %v24_v14 = vlaneseq  ;;  %v57_v18 = vmov 0.003125   ;;  %s85_s0 = inlined_call_operand.vmem [shape: f32[8,32], index: 0, kind: input, shape index: {}]   ;;  %s86_s1 = inlined_call_operand.vmem [shape: s32[8,1], index: 1, kind: input, shape index: {}]   ;;  %s87_s2 = inlined_call_operand.vmem [shape: f32[8,1], index: 2, kind: output, shape index: {}]  }
   0x1   :  { %v11_v0 = vld [vmem:[%s85_s0] sm:$0xff]  ;;  %48 = vset.pattern.permute.xlu1 %v56_v2  ;;  %49 = vset.pattern.permute.xlu0 %v56_v2  ;;  %vm40_vm2 = vcmask 7168  }
   0x2   :  { %v13_v1 = vsel %vm12_vm0, %v11_v0, -inf  ;;  %v23_v3 = vld [vmem:[%s86_s1] sm:$0xff]  ;;  %v25_v15 = vand.u32 127, %v24_v14 }
   0x3   :  { %14 = vmax.xlane.f32.xlu0 %v13_v1  ;;  %27 = vperm.xlu1 %48, %v23_v3  }
  0x7e   :  { %v28_v16 = vpop.permute.xlu1 %27 }
  0x7f   :  { %vm29_vm1 = vcmp.eq.s32.totalorder %v25_v15, %v28_v16 }
  0x80   :  { %v35_v19 = vsel %vm29_vm1, 0.903125, %v57_v18 }
  0x8c   :  { %v15_v4 = vpop.xlane.xlu0 %14 }
  0x8d   :  { %v16_v5 = vsub.f32 %v11_v0, %v15_v4 }
  0x8f   :  { %v17_v6 = vmul.f32 1.442695, %v16_v5 }
  0x91   :  { %50 = vpow2.f32 %v17_v6 }
  0x9e   :  { %v51_v7 = vpop.eup %50 }
  0x9f   :  { %v19_v8 = vsel %vm12_vm0, %v51_v7, 0.0 }
  0xa0   :  { %20 = vadd.xlane.f32.xlu0 %v19_v8 }
 0x129   :  { %v21_v9 = vpop.xlane.xlu0 %20 }
 0x12a   :  { %52 = vrcp.f32 %v21_v9 }
 0x137   :  { %v53_v10 = vpop.eup %52 }
 0x138   :  { %v30_v11 = vmul.f32 %v53_v10, %v51_v7 }
 0x13a   :  { %v31_v12 = vsub.f32 1.0, %v30_v11 }
 0x13c   :  { %v32_v13 = vadd.f32 1e-12, %v31_v12 }
 0x13e   :  { %54 = vlog2.f32 %v32_v13 }
 0x14b   :  { %v55_v17 = vpop.eup %54 }
 0x14c   :  { %v34_v20 = vmul.f32 0.6931472, %v55_v17 }
 0x14e   :  { %v36_v21 = vmul.f32 %v35_v19, %v34_v20 }
 0x150   :  { %v37_v22 = vsel %vm12_vm0, %v36_v21, 0.0 }
 0x151   :  { %38 = vadd.xlane.f32.xlu1 %v37_v22 }
 0x1da   :  { %v39_v23 = vpop.xlane.xlu1 %38 }
 0x1db   :  { %41 = vst.msk [vmem:[%s87_s2] sm:$0xff] %vm40_vm2, %v39_v23 }

</bundles_post_ra>
